<compile_context>
chip_gen: v7x
topology: tpu7x:2x2x1
jax: 0.10.0
libtpu: 0.0.40
codegen_flags: <defaults>
</compile_context>

<pallas_src>
import functools
import math

import jax
import jax.numpy as jnp
from jax.experimental import pallas as pl
from jax.experimental.pallas import tpu as pltpu

EPS = 1e-5  # PyTorch default eps for BatchNorm1d / InstanceNorm1d


# ----------------------------- budgets & tiling helpers --------------------- #

def _round_up(x, m):
    return ((x + m - 1) // m) * m


def _sublane(dtype):
    # native sublane tile: 8 for f32, 16 for bf16, 32 for int8/fp8
    return max(8, 32 // jnp.dtype(dtype).itemsize)


def _budgets():
    """(per-tile working-set budget, vmem_limit_bytes), generation-aware."""
    vmem_cap = 64 * 1024 * 1024
    try:
        info = pltpu.get_tpu_info()
        vmem_cap = int(getattr(info, "vmem_capacity_bytes", vmem_cap))
    except Exception:
        pass
    if vmem_cap >= 128 * 1024 * 1024:          # v5e / v6e
        return 12 * 1024 * 1024, 64 * 1024 * 1024
    return 8 * 1024 * 1024, 48 * 1024 * 1024   # v7x (64 MiB physical VMEM)


def _padded_block_bytes(block_shape, dtype):
    """Bytes one block really occupies in VMEM (lane dim -> 128, sublane dim -> tile)."""
    shape = list(block_shape)
    if len(shape) >= 1:
        shape[-1] = _round_up(shape[-1], 128)
    if len(shape) >= 2:
        shape[-2] = _round_up(shape[-2], _sublane(dtype))
    n = 1
    for s in shape:
        n *= int(s)
    return n * jnp.dtype(dtype).itemsize


def _tile_cost(block_shape, dtype):
    """Padding-aware working-set estimate for one streaming normalize block:
    2x double-buffered input + 2x double-buffered output + ~3 f32 temporaries."""
    io = _padded_block_bytes(block_shape, dtype)
    f32 = _padded_block_bytes(block_shape, jnp.float32)
    return 4 * io + 3 * f32


def _pick_tile(dim, mult, budget, cost_fn):
    """Largest multiple of `mult` (<= dim, or dim itself when dim <= mult) whose block
    cost fits `budget`.  Prefers a grid of >= 2 blocks so both v7x TensorCores get work.
    Returns None if even the smallest granule does not fit."""
    mult = max(1, int(mult))
    if dim <= mult:
        return dim if cost_fn(dim) <= budget else None
    base = max(cost_fn(mult), 1)
    est = max(mult, (budget // base) * mult)   # linear estimate of the cap
    t = min((dim // mult) * mult, est)
    t -= t % mult
    t = max(t, mult)
    while t > mult and cost_fn(t) > budget:
        t -= mult
    if cost_fn(t) > budget:
        return None
    if t == dim:                               # keep >= 2 parallel blocks when possible
        half = _round_up((dim + 1) // 2, mult)
        if mult <= half < dim:
            t = half
    return t


def _compiler_params(semantics, vmem_limit):
    return pltpu.CompilerParams(dimension_semantics=semantics,
                                vmem_limit_bytes=int(vmem_limit))


def _segment_matrix(groups, seg_len):
    """(groups*seg_len, groups) block-diagonal ones: column g selects segment g."""
    rows = jnp.arange(groups * seg_len, dtype=jnp.int32) // seg_len
    cols = jnp.arange(groups, dtype=jnp.int32)
    return (rows[:, None] == cols[None, :]).astype(jnp.float32)


# ----------------------------- kernels ------------------------------------- #

def _rownorm_kernel(x_ref, o_ref):
    """Instance norm on a (tile_r, L) block: per-row stats over the last axis."""
    x = x_ref[...].astype(jnp.float32)
    mean = jnp.mean(x, axis=-1, keepdims=True)
    xc = x - mean
    var = jnp.mean(xc * xc, axis=-1, keepdims=True)
    o_ref[...] = (xc * jax.lax.rsqrt(var + EPS)).astype(o_ref.dtype)


def _rownorm_packed_kernel(s_ref, st_ref, x_ref, o_ref, *, seg_len):
    """Instance norm on a lane-packed (tile_r, G*L) block.

    Each packed row holds G original rows of length L; segment sums use the
    block-diagonal ones matrix S (G*L, G) on the otherwise-idle MXU, and the
    per-segment mean / inv-std are broadcast back with S^T (G, G*L)."""
    x = x_ref[...].astype(jnp.float32)                                   # (T, G*L)
    S = s_ref[...]                                                       # (G*L, G)
    ST = st_ref[...]                                                     # (G, G*L)
    inv_n = 1.0 / seg_len
    mean = jnp.dot(x, S, preferred_element_type=jnp.float32) * inv_n     # (T, G)
    mean_b = jnp.dot(mean, ST, preferred_element_type=jnp.float32)       # (T, G*L)
    xc = x - mean_b
    var = jnp.dot(xc * xc, S, preferred_element_type=jnp.float32) * inv_n
    inv_b = jnp.dot(jax.lax.rsqrt(var + EPS), ST,
                    preferred_element_type=jnp.float32)                  # (T, G*L)
    o_ref[...] = (xc * inv_b).astype(o_ref.dtype)


def _bn_fused_kernel(x_ref, o_ref):
    """BatchNorm on a (N, tile_c, L) block: per-channel stats over (N, L)."""
    x = x_ref[...].astype(jnp.float32)
    count = x.shape[0] * x.shape[2]
    s = jnp.sum(jnp.sum(x, axis=0), axis=-1, keepdims=True)              # (tile_c, 1)
    mean = s / count
    xc = x - mean[None]
    var = jnp.sum(jnp.sum(xc * xc, axis=0), axis=-1, keepdims=True) / count
    o_ref[...] = (xc * jax.lax.rsqrt(var + EPS)[None]).astype(o_ref.dtype)


def _bn_packed_fused_kernel(s_ref, st_ref, x_ref, o_ref, *, count):
    """BatchNorm on a lane-packed (N, tile_c*L) block: per-channel stats over (N, L)
    via a block-diagonal ones matmul (S) and broadcast-back with S^T."""
    x = x_ref[...].astype(jnp.float32)                                   # (N, tile_c*L)
    S = s_ref[...]                                                       # (tile_c*L, tile_c)
    ST = st_ref[...]                                                     # (tile_c, tile_c*L)
    inv_n = 1.0 / count
    row_seg = jnp.dot(x, S, preferred_element_type=jnp.float32)          # (N, tile_c)
    mean = jnp.sum(row_seg, axis=0, keepdims=True) * inv_n               # (1, tile_c)
    mean_b = jnp.dot(mean, ST, preferred_element_type=jnp.float32)       # (1, tile_c*L)
    xc = x - mean_b
    sq_row = jnp.sum(xc * xc, axis=0, keepdims=True)                     # (1, tile_c*L)
    var = jnp.dot(sq_row, S, preferred_element_type=jnp.float32) * inv_n # (1, tile_c)
    inv_b = jnp.dot(jax.lax.rsqrt(var + EPS), ST,
                    preferred_element_type=jnp.float32)                  # (1, tile_c*L)
    o_ref[...] = (xc * inv_b).astype(o_ref.dtype)


def _bn_stats_kernel(x_ref, sum_ref, sq_ref):
    """Accumulate per-channel sum / sum-of-squares across the batch grid axis."""
    n = pl.program_id(1)

    @pl.when(n == 0)
    def _():
        sum_ref[...] = jnp.zeros_like(sum_ref)
        sq_ref[...] = jnp.zeros_like(sq_ref)

    x = x_ref[...].astype(jnp.float32)                                   # (tile_n, tile_c, L)
    sum_ref[...] += jnp.sum(jnp.sum(x, axis=0), axis=-1, keepdims=True)
    sq_ref[...] += jnp.sum(jnp.sum(x * x, axis=0), axis=-1, keepdims=True)


def _bn_apply_kernel(sum_ref, sq_ref, x_ref, o_ref, *, count):
    """Normalize a (tile_n, tile_c, L) block with precomputed channel stats."""
    # TODO(synk): E[x^2] - mean^2 can cancel for |mean| >> std; a shifted two-pass
    # formulation would be more robust (the fused paths use centered variance).
    mean = sum_ref[...] / count                                          # (tile_c, 1)
    var = sq_ref[...] / count - mean * mean
    inv = jax.lax.rsqrt(var + EPS)
    x = x_ref[...].astype(jnp.float32)
    o_ref[...] = ((x - mean[None]) * inv[None]).astype(o_ref.dtype)


# ----------------------------- instance norm -------------------------------- #

def _instancenorm_packed(x, G, tile_r, vmem_limit):
    N, C, L = x.shape
    R = N * C
    Rp, W = R // G, G * L
    xr = x.reshape(Rp, W)                       # contiguous reshape: metadata only
    S = _segment_matrix(G, L)                   # (G*L, G)
    ST = jnp.transpose(S)                       # (G, G*L)
    y = pl.pallas_call(
        functools.partial(_rownorm_packed_kernel, seg_len=float(L)),
        out_shape=jax.ShapeDtypeStruct((Rp, W), x.dtype),
        grid=(pl.cdiv(Rp, tile_r),),
        in_specs=[pl.BlockSpec((W, G), lambda i: (0, 0)),
                  pl.BlockSpec((G, W), lambda i: (0, 0)),
                  pl.BlockSpec((tile_r, W), lambda i: (i, 0))],
        out_specs=pl.BlockSpec((tile_r, W), lambda i: (i, 0)),
        compiler_params=_compiler_params(("parallel",), vmem_limit),
    )(S, ST, xr)
    return y.reshape(N, C, L)


def _instancenorm_forward(x, force_plain=False):
    N, C, L = x.shape
    R = N * C
    dtype = x.dtype
    tile_budget, vmem_limit = _budgets()
    sub = _sublane(dtype)

    # Lane-dense packed path: (R, L) -> (R/G, G*L) with G*L a multiple of 128.
    if not force_plain and L % 128 != 0:
        g0 = 128 // math.gcd(L, 128)
        if R % g0 == 0:
            G = g0
            Rp, W = R // G, G * L
            tile_r = _pick_tile(Rp, min(sub, Rp), tile_budget,
                                lambda t: _tile_cost((t, W), dtype))
            if tile_r is not None:
                return _instancenorm_packed(x, G, tile_r, vmem_limit)

    # Plain path (already lane-dense when L % 128 == 0; masked stores otherwise).
    xr = x.reshape(R, L)
    tile_r = _pick_tile(R, min(sub, R), tile_budget,
                        lambda t: _tile_cost((t, L), dtype))
    if tile_r is None:
        # TODO(synk): rows larger than the VMEM budget would need an L-tiled two-pass.
        tile_r = min(sub, R)
    y = pl.pallas_call(
        _rownorm_kernel,
        out_shape=jax.ShapeDtypeStruct((R, L), dtype),
        grid=(pl.cdiv(R, tile_r),),
        in_specs=[pl.BlockSpec((tile_r, L), lambda i: (i, 0))],
        out_specs=pl.BlockSpec((tile_r, L), lambda i: (i, 0)),
        compiler_params=_compiler_params(("parallel",), vmem_limit),
    )(xr)
    return y.reshape(N, C, L)


# ----------------------------- batch norm ----------------------------------- #

def _batchnorm_packed_fused(x, tile_c, vmem_limit):
    N, C, L = x.shape
    xv = x.reshape(N, C * L)                    # contiguous reshape: metadata only
    W = tile_c * L
    S = _segment_matrix(tile_c, L)              # (tile_c*L, tile_c)
    ST = jnp.transpose(S)
    y = pl.pallas_call(
        functools.partial(_bn_packed_fused_kernel, count=float(N * L)),
        out_shape=jax.ShapeDtypeStruct((N, C * L), x.dtype),
        grid=(pl.cdiv(C, tile_c),),
        in_specs=[pl.BlockSpec((W, tile_c), lambda c: (0, 0)),
                  pl.BlockSpec((tile_c, W), lambda c: (0, 0)),
                  pl.BlockSpec((N, W), lambda c: (0, c))],
        out_specs=pl.BlockSpec((N, W), lambda c: (0, c)),
        compiler_params=_compiler_params(("parallel",), vmem_limit),
    )(S, ST, xv)
    return y.reshape(N, C, L)


def _batchnorm_fused(x, tile_c, vmem_limit):
    N, C, L = x.shape
    return pl.pallas_call(
        _bn_fused_kernel,
        out_shape=jax.ShapeDtypeStruct(x.shape, x.dtype),
        grid=(pl.cdiv(C, tile_c),),
        in_specs=[pl.BlockSpec((N, tile_c, L), lambda c: (0, c, 0))],
        out_specs=pl.BlockSpec((N, tile_c, L), lambda c: (0, c, 0)),
        compiler_params=_compiler_params(("parallel",), vmem_limit),
    )(x)


def _batchnorm_twopass(x, tile_c=None, tile_n=None, tile_budget=None, vmem_limit=None):
    """Stats-accumulate + normalize passes (3 HBM passes, never OOMs VMEM)."""
    N, C, L = x.shape
    dtype = x.dtype
    if tile_budget is None or vmem_limit is None:
        tile_budget, vmem_limit = _budgets()
    sub = _sublane(dtype)

    if tile_c is None:
        tile_c = _pick_tile(C, min(sub, C), tile_budget,
                            lambda tc: _tile_cost((1, tc, L), dtype))
        if tile_c is None:
            tile_c = min(sub, C)
    if tile_n is None:
        # tile_n must divide N exactly (ragged batch blocks would corrupt the stats).
        tile_n = 1
        for cand in range(N, 0, -1):
            if N % cand == 0 and _tile_cost((cand, tile_c, L), dtype) <= tile_budget:
                tile_n = cand
                break

    cg = pl.cdiv(C, tile_c)
    ng = N // tile_n

    sums, sqs = pl.pallas_call(
        _bn_stats_kernel,
        out_shape=(jax.ShapeDtypeStruct((C, 1), jnp.float32),
                   jax.ShapeDtypeStruct((C, 1), jnp.float32)),
        grid=(cg, ng),
        in_specs=[pl.BlockSpec((tile_n, tile_c, L), lambda c, n: (n, c, 0))],
        out_specs=(pl.BlockSpec((tile_c, 1), lambda c, n: (c, 0)),
                   pl.BlockSpec((tile_c, 1), lambda c, n: (c, 0))),
        compiler_params=_compiler_params(("parallel", "arbitrary"), vmem_limit),
    )(x)

    return pl.pallas_call(
        functools.partial(_bn_apply_kernel, count=float(N * L)),
        out_shape=jax.ShapeDtypeStruct(x.shape, x.dtype),
        grid=(cg, ng),
        in_specs=[pl.BlockSpec((tile_c, 1), lambda c, n: (c, 0)),
                  pl.BlockSpec((tile_c, 1), lambda c, n: (c, 0)),
                  pl.BlockSpec((tile_n, tile_c, L), lambda c, n: (n, c, 0))],
        out_specs=pl.BlockSpec((tile_n, tile_c, L), lambda c, n: (n, c, 0)),
        compiler_params=_compiler_params(("parallel", "parallel"), vmem_limit),
    )(sums, sqs, x)


def _batchnorm_forward(x):
    N, C, L = x.shape
    dtype = x.dtype
    tile_budget, vmem_limit = _budgets()
    sub = _sublane(dtype)

    # (a) Lane-dense packed fused path (single read + write of x).
    if L % 128 != 0:
        g0 = 128 // math.gcd(L, 128)
        mult_c = min(g0, C)
        tile_c = _pick_tile(C, mult_c, tile_budget,
                            lambda tc: _tile_cost((N, tc * L), dtype))
        if tile_c is not None and (tile_c % g0 == 0 or tile_c == C):
            return _batchnorm_packed_fused(x, tile_c, vmem_limit)

    # (b) Non-packed fused path (lane-dense already when L % 128 == 0).
    tile_c = _pick_tile(C, min(sub, C), tile_budget,
                        lambda tc: _tile_cost((N, tc, L), dtype))
    if tile_c is not None:
        return _batchnorm_fused(x, tile_c, vmem_limit)

    # (c) Channel slab too large for VMEM: stats-accumulate + normalize passes.
    return _batchnorm_twopass(x, tile_budget=tile_budget, vmem_limit=vmem_limit)


# ----------------------------- public forward ------------------------------- #

def normalization_forward(x, norm_method=None):
    """Forward pass of Normalization for x of shape (N, C, L)."""
    if norm_method is None:
        return x                                 # nn.Identity(): zero HBM traffic
    if norm_method == "batchnorm":
        return _batchnorm_forward(x)
    if norm_method == "instancenorm":
        return _instancenorm_forward(x)
    raise ValueError(f"unknown norm_method: {norm_method}")


# TODO(synk): BatchNorm1d running-stat buffer updates / eval mode and 2-D (N, C) inputs
# are out of scope; only the affine=False training-mode forward on (N, C, L) is implemented.


# ----------------------------- reference & test ----------------------------- #

def _reference(x, norm_method):
    if norm_method is None:
        return x
    if norm_method == "batchnorm":
        mean = jnp.mean(x, axis=(0, 2), keepdims=True)
        var = jnp.mean((x - mean) ** 2, axis=(0, 2), keepdims=True)
        return (x - mean) / jnp.sqrt(var + EPS)
    mean = jnp.mean(x, axis=2, keepdims=True)
    var = jnp.mean((x - mean) ** 2, axis=2, keepdims=True)
    return (x - mean) / jnp.sqrt(var + EPS)


if __name__ == "__main__":
    key = jax.random.PRNGKey(0)
    k1, k2 = jax.random.split(key)
    ok = True

    # Small length -> lane-packed kernels are the default paths.
    x1 = jax.random.normal(k1, (2, 32, 16), dtype=jnp.float32)   # (batch, latent, length)
    # Length that is a multiple of 128 -> plain / non-packed fused paths.
    x2 = jax.random.normal(k2, (2, 16, 128), dtype=jnp.float32)

    for x in (x1, x2):
        for method in (None, "batchnorm", "instancenorm"):
            y = jax.block_until_ready(normalization_forward(x, method))
            ok &= bool(jnp.allclose(y, _reference(x, method), atol=1e-4, rtol=1e-4))

    # Exercise the two-pass batchnorm fallback and the plain instancenorm path too.
    y = jax.block_until_ready(_batchnorm_twopass(x2, tile_c=8, tile_n=1))
    ok &= bool(jnp.allclose(y, _reference(x2, "batchnorm"), atol=1e-4, rtol=1e-4))
    y = jax.block_until_ready(_instancenorm_forward(x1, force_plain=True))
    ok &= bool(jnp.allclose(y, _reference(x1, "instancenorm"), atol=1e-4, rtol=1e-4))

    print("KERNEL_OK" if ok else "KERNEL_MISMATCH")
</pallas_src>

<mosaic_0001>
module attributes {stable_mosaic.version = 11 : i64} {
  func.func @_bn_packed_fused_kernel(%arg0: i32, %arg1: memref<256x16xf32, #tpu.memory_space<vmem>>, %arg2: memref<16x256xf32, #tpu.memory_space<vmem>>, %arg3: memref<2x256xf32, #tpu.memory_space<vmem>>, %arg4: memref<2x256xf32, #tpu.memory_space<vmem>>) attributes {dimension_semantics = [#tpu.dimension_semantics<parallel>], iteration_bounds = array<i64: 2>, scalar_prefetch = 0 : i64, scratch_operands = 0 : i64, tpu.core_type = #tpu.core_type<tc>, window_params = [{pipeline_mode = #tpu.pipeline_mode<synchronous>, transform_indices = @transform_0, window_bounds = array<i64: 256, 16>}, {pipeline_mode = #tpu.pipeline_mode<synchronous>, transform_indices = @transform_1, window_bounds = array<i64: 16, 256>}, {transform_indices = @transform_2, window_bounds = array<i64: 2, 256>}, {transform_indices = @transform_3, window_bounds = array<i64: 2, 256>}]} {
    %c0 = arith.constant 0 : index
    %c0_0 = arith.constant 0 : index
    %0 = vector.load %arg3[%c0, %c0_0] : memref<2x256xf32, #tpu.memory_space<vmem>>, vector<2x256xf32>
    %c0_1 = arith.constant 0 : index
    %c0_2 = arith.constant 0 : index
    %1 = vector.load %arg1[%c0_1, %c0_2] : memref<256x16xf32, #tpu.memory_space<vmem>>, vector<256x16xf32>
    %c0_3 = arith.constant 0 : index
    %c0_4 = arith.constant 0 : index
    %2 = vector.load %arg2[%c0_3, %c0_4] : memref<16x256xf32, #tpu.memory_space<vmem>>, vector<16x256xf32>
    %cst = arith.constant dense<0.000000e+00> : vector<2x16xf32>
    %3 = tpu.matmul %0, %1, %cst {dimension_numbers = #tpu.dot_dimension_numbers<[1], [0], [0], [1], [0, 0, 1, 1], [], []>} : vector<2x256xf32>, vector<256x16xf32>, vector<2x16xf32> -> vector<2x16xf32>
    %cst_5 = arith.constant dense<0.000000e+00> : vector<16xf32>
    %4 = vector.multi_reduction <add>, %3, %cst_5 [0] : vector<2x16xf32> to vector<16xf32>
    %5 = vector.shape_cast %4 : vector<16xf32> to vector<1x16xf32>
    %cst_6 = arith.constant 3.125000e-02 : f32
    %6 = vector.broadcast %cst_6 : f32 to vector<1x16xf32>
    %7 = arith.mulf %5, %6 : vector<1x16xf32>
    %cst_7 = arith.constant dense<0.000000e+00> : vector<1x256xf32>
    %8 = tpu.matmul %7, %2, %cst_7 {dimension_numbers = #tpu.dot_dimension_numbers<[1], [0], [0], [1], [0, 0, 1, 1], [], []>} : vector<1x16xf32>, vector<16x256xf32>, vector<1x256xf32> -> vector<1x256xf32>
    %9 = vector.broadcast %8 : vector<1x256xf32> to vector<2x256xf32>
    %10 = arith.subf %0, %9 : vector<2x256xf32>
    %11 = arith.mulf %10, %10 : vector<2x256xf32>
    %cst_8 = arith.constant dense<0.000000e+00> : vector<256xf32>
    %12 = vector.multi_reduction <add>, %11, %cst_8 [0] : vector<2x256xf32> to vector<256xf32>
    %13 = vector.shape_cast %12 : vector<256xf32> to vector<1x256xf32>
    %cst_9 = arith.constant dense<0.000000e+00> : vector<1x16xf32>
    %14 = tpu.matmul %13, %1, %cst_9 {dimension_numbers = #tpu.dot_dimension_numbers<[1], [0], [0], [1], [0, 0, 1, 1], [], []>} : vector<1x256xf32>, vector<256x16xf32>, vector<1x16xf32> -> vector<1x16xf32>
    %cst_10 = arith.constant 3.125000e-02 : f32
    %15 = vector.broadcast %cst_10 : f32 to vector<1x16xf32>
    %16 = arith.mulf %14, %15 : vector<1x16xf32>
    %cst_11 = arith.constant 9.99999974E-6 : f32
    %17 = vector.broadcast %cst_11 : f32 to vector<1x16xf32>
    %18 = arith.addf %16, %17 : vector<1x16xf32>
    %19 = math.rsqrt %18 : vector<1x16xf32>
    %cst_12 = arith.constant dense<0.000000e+00> : vector<1x256xf32>
    %20 = tpu.matmul %19, %2, %cst_12 {dimension_numbers = #tpu.dot_dimension_numbers<[1], [0], [0], [1], [0, 0, 1, 1], [], []>} : vector<1x16xf32>, vector<16x256xf32>, vector<1x256xf32> -> vector<1x256xf32>
    %21 = vector.broadcast %20 : vector<1x256xf32> to vector<2x256xf32>
    %22 = arith.mulf %10, %21 : vector<2x256xf32>
    %c0_13 = arith.constant 0 : index
    %c0_14 = arith.constant 0 : index
    %23 = vector.load %arg4[%c0_13, %c0_14] : memref<2x256xf32, #tpu.memory_space<vmem>>, vector<2x256xf32>
    tpu.vector_store %arg4[%c0_13, %c0_14], %22 {strides = array<i32>} : memref<2x256xf32, #tpu.memory_space<vmem>>, vector<2x256xf32>,
    return
  }
  func.func @transform_0(%arg0: i32) -> (i32, i32) {
    %c0_i32 = arith.constant 0 : i32
    %c0_i32_0 = arith.constant 0 : i32
    %c0_i32_1 = arith.constant 0 : i32
    return %c0_i32, %c0_i32_0 : i32, i32
  }
  func.func @transform_1(%arg0: i32) -> (i32, i32) {
    %c0_i32 = arith.constant 0 : i32
    %c0_i32_0 = arith.constant 0 : i32
    %c0_i32_1 = arith.constant 0 : i32
    return %c0_i32, %c0_i32_0 : i32, i32
  }
  func.func @transform_2(%arg0: i32) -> (i32, i32) {
    %c0_i32 = arith.constant 0 : i32
    %c0_i32_0 = arith.constant 0 : i32
    return %c0_i32, %arg0 : i32, i32
  }
  func.func @transform_3(%arg0: i32) -> (i32, i32) {
    %c0_i32 = arith.constant 0 : i32
    %c0_i32_0 = arith.constant 0 : i32
    return %c0_i32, %arg0 : i32, i32
  }
}

</mosaic_0001>

<bundles_post_ra>
// kernel: tpu_custom_call.1
= control target key start
LH: loop header
LB: loop body
LE: loop exit
PB: predicated region body
PF: predicated region fallthrough
CT: control target
= control target key end

     0   :  { %8 = vsyncpa [#allocation3], 0  ;;  %s1209_s0 = inlined_call_operand.vmem [shape: f32[256,16], index: 0, kind: input, shape index: {}]   ;;  %s1210_s1 = inlined_call_operand.vmem [shape: f32[16,256], index: 1, kind: input, shape index: {}]   ;;  %s1211_s2 = inlined_call_operand.vmem [shape: f32[2,512], index: 2, kind: input, shape index: {}]   ;;  %s1212_s3 = inlined_call_operand.hbm [shape: f32[2,512], index: 3, kind: output, shape index: {}]  }
   0x1   :  { %10 = vsyncpa [#allocation3 + $0x1], 0  ;;  %s950_s12 = smov 0   ;;  %s952_s13 = smov 0  }
   0x2   :  { %s954_s14 = smov 0   ;;  %s956_s15 = smov 0  }
   0x3 LB: > { %s971_s16 = sadd.s32 4294967295, %s925_s15   ;;  %s663_s17 = sadd.s32 4294967294, %s925_s15   ;;  %s925_s15 = sphi %s956_s15, %s1218_s15   ;;  %s921_s14 = sphi %s954_s14, %s1217_s14   ;;  %s917_s13 = sphi %s952_s13, %s1216_s13   ;;  %s913_s12 = sphi %s950_s12, %s1215_s12  }
   0x4   : > { %s975_s18 = sadd.s32 1, %s925_s15   ;;  %s91_s19 = sadd.s32 1, %s921_s14 }
   0x5   : > { %s88_s20 = ssub.s32 %s925_s15, %s975_s18  ;;  %p101_p0 = scmp.ne.s32.totalorder %s921_s14, %s917_s13 }
   0x6   : > { %p89_p1 = scmp.eq.s32.totalorder %s88_s20, 0  ;;  %p102_p2 = scmp.eq.s32.totalorder %s971_s16, 1 }
   0x7   : > { %p107_p3 = scmp.ne.s32.totalorder %s917_s13, %s913_s12  ;;  %p108_p4 = scmp.eq.s32.totalorder %s663_s17, 1 }
   0x8   : > { %s986_s21 = scalar_select %p89_p1, %s921_s14, %s91_s19  }
   0x9   : > { %p988_p5 = por %p102_p2, %p101_p0  ;;  %p992_p6 = por %p108_p4, %p107_p3 }
   0xa   : > { %p666_p7 = scmp.ge.s32.totalorder %s925_s15, 1  ;;  %p141_p8 = scmp.lt.s32.totalorder %s925_s15, 3 }
   0xc   : > { %p142_p9 = pnand %p666_p7, %p141_p8 }
   0xd   : > { %v189_v0 = vld [vmem:[%s1209_s0 + $0x80] sm:$0xff] (!%p142_p9)  ;;  %v190_v1 = vld [vmem:[%s1209_s0 + $0x88] sm:$0xff] (!%p142_p9)  ;;  %s668_s30 = sshll.u32 (!%p142_p9), %s971_s16, 1  ;;  %v213_v3 = vlaneseq (!%p142_p9)  ;;  %v191_v6 = vld [vmem:[%s1209_s0 + $0x90] sm:$0xff] (!%p142_p9)  ;;  %v927_v8 = vmov (!%p142_p9), 1983009808  }
   0xe   : > { %145 = sbr.rel (%p142_p9) target bundleno = 984 (0x3d8), region = 32  ;;  %v173_v2 = vld [vmem:[%s1209_s0] sm:$0xff] (!%p142_p9)  ;;  %v1008_v4 = vpack.c.bf16 (!%p142_p9), %v190_v1, %v189_v0  ;;  %v174_v5 = vld [vmem:[%s1209_s0 + $0x8] sm:$0xff] (!%p142_p9)  ;;  %v192_v7 = vld [vmem:[%s1209_s0 + $0x98] sm:$0xff] (!%p142_p9)  ;;  %p166_p10 = scmp.lt.s32.totalorder (!%p142_p9), %s668_s30, 3  ;;  %v211_v9 = vunpack.c.l.s4 (!%p142_p9), %v927_v8  ;;  %v928_v63 = vmov (!%p142_p9), 0.0  }
   0xf   : > { %v1019_v10 = vpack.c.bf16 (!%p142_p9), %v174_v5, %v173_v2  ;;  %v1021_v11 = vpack.c.bf16 (!%p142_p9), %v192_v7, %v191_v6  ;;  %v175_v12 = vld [vmem:[%s1209_s0 + $0x10] sm:$0xff] (!%p142_p9)  ;;  %v176_v13 = vld [vmem:[%s1209_s0 + $0x18] sm:$0xff] (!%p142_p9)  ;;  %v193_v14 = vld [vmem:[%s1209_s0 + $0xa0] sm:$0xff] (!%p142_p9)  ;;  %v1036_v17 = vshrl.u32 (!%p142_p9), %v213_v3, 7  ;;  %367 = vmatprep.mubr.f32.mxu1 (!%p142_p9), %v928_v63  ;;  %vm290_vm0 = vcmask (!%p142_p9), 123904   ;;  %s162_s29 = sand.u32 (!%p142_p9), 1, %s917_s13  }
  0x10   : > { %749 = vmatprep.subr.bf16.mxu0 (!%p142_p9), %v1008_v4  ;;  %v194_v15 = vld [vmem:[%s1209_s0 + $0xa8] sm:$0xff] (!%p142_p9)  ;;  %v212_v16 = vunpack.c.0.s8 (!%p142_p9), %v211_v9  ;;  %v1039_v18 = vpack.c.bf16 (!%p142_p9), %v176_v13, %v175_v12  ;;  %v177_v20 = vld [vmem:[%s1209_s0 + $0x20] sm:$0xff] (!%p142_p9)  ;;  %v195_v22 = vld [vmem:[%s1209_s0 + $0xb0] sm:$0xff] (!%p142_p9)  ;;  %vm299_vm1 = vcmask (!%p142_p9), 130048   ;;  %vm406_vm2 = vcmask (!%p142_p9), 1041408   ;;  %s667_s4 = sshll.u32 (!%p142_p9), %s162_s29, 2 }
  0x11   : > { %751 = vmatpush3.bf16.msra.mxu0 (!%p142_p9), %v1019_v10  ;;  %v1042_v19 = vpack.c.bf16 (!%p142_p9), %v194_v15, %v193_v14  ;;  %v178_v21 = vld [vmem:[%s1209_s0 + $0x28] sm:$0xff] (!%p142_p9)  ;;  %v196_v23 = vld [vmem:[%s1209_s0 + $0xb8] sm:$0xff] (!%p142_p9)  ;;  %v179_v27 = vld [vmem:[%s1209_s0 + $0x30] sm:$0xff] (!%p142_p9)  ;;  %s164_s6 = scalar_lea.vmem (!%p142_p9), [#allocation2], %s667_s4  ;;  %s590_s11 = scalar_lea.sflag (!%p142_p9), [#allocation3], %s162_s29 }
  0x12   : > { %753 = vmatprep.subr.bf16.mxu0 (!%p142_p9), %v1021_v11  ;;  %v1060_v24 = vsub.s32 (!%p142_p9), %v212_v16, %v1036_v17  ;;  %v1063_v25 = vpack.c.bf16 (!%p142_p9), %v178_v21, %v177_v20  ;;  %v1066_v26 = vpack.c.bf16 (!%p142_p9), %v196_v23, %v195_v22  ;;  %v180_v28 = vld [vmem:[%s1209_s0 + $0x38] sm:$0xff] (!%p142_p9)  ;;  %v197_v29 = vld [vmem:[%s1209_s0 + $0xc0] sm:$0xff] (!%p142_p9)  ;;  %v198_v30 = vld [vmem:[%s1209_s0 + $0xc8] sm:$0xff] (!%p142_p9)  ;;  %s604_s7 = sshll.u32 (!%p142_p9), %s164_s6, 4  ;;  %s1169_s7 = int_to_ptr.vmem [resolvable:$true] %s604_s7 }
  0x13   : > { %v1085_v33 = vpack.c.bf16 (!%p142_p9), %v180_v28, %v179_v27  ;;  %v1088_v34 = vpack.c.bf16 (!%p142_p9), %v198_v30, %v197_v29  ;;  %v181_v35 = vld [vmem:[%s1209_s0 + $0x40] sm:$0xff] (!%p142_p9)  ;;  %v182_v36 = vld [vmem:[%s1209_s0 + $0x48] sm:$0xff] (!%p142_p9)  ;;  %v199_v38 = vld [vmem:[%s1209_s0 + $0xd0] sm:$0xff] (!%p142_p9) }
  0x14   : > { %v200_v39 = vld [vmem:[%s1209_s0 + $0xd8] sm:$0xff] (!%p142_p9)  ;;  %v766_v40 = vpack.c.bf16 (!%p142_p9), %v182_v36, %v181_v35  ;;  %v183_v42 = vld [vmem:[%s1209_s0 + $0x50] sm:$0xff] (!%p142_p9)  ;;  %v201_v44 = vld [vmem:[%s1209_s0 + $0xe0] sm:$0xff] (!%p142_p9) }
  0x15   : > { %s1220_s30 = smov (!%p166_p10, %s668_s30), 3  ;;  %755 = vmatpush3.bf16.msra.mxu0 %v1039_v18  ;;  %v768_v41 = vpack.c.bf16 %v200_v39, %v199_v38  ;;  %v184_v43 = vld [vmem:[%s1209_s0 + $0x58] sm:$0xff]  ;;  %v202_v45 = vld [vmem:[%s1209_s0 + $0xe8] sm:$0xff]  ;;  %v185_v48 = vld [vmem:[%s1209_s0 + $0x60] sm:$0xff] }
  0x16   : > { %s669_s5 = sshll.u32 %s1220_s30, 1  ;;  %757 = vmatprep.subr.bf16.mxu0 %v1042_v19  ;;  %v770_v46 = vpack.c.bf16 %v184_v43, %v183_v42  ;;  %v772_v47 = vpack.c.bf16 %v202_v45, %v201_v44  ;;  %v186_v49 = vld [vmem:[%s1209_s0 + $0x68] sm:$0xff]  ;;  %v203_v50 = vld [vmem:[%s1209_s0 + $0xf0] sm:$0xff]  ;;  %v204_v51 = vld [vmem:[%s1209_s0 + $0xf8] sm:$0xff] }
  0x17   : > { %s169_s17 = scalar_lea.vmem %s1211_s2, %s669_s5  ;;  %v774_v52 = vpack.c.bf16 %v186_v49, %v185_v48  ;;  %v776_v53 = vpack.c.bf16 %v204_v51, %v203_v50  ;;  %v187_v54 = vld [vmem:[%s1209_s0 + $0x70] sm:$0xff]  ;;  %v188_v55 = vld [vmem:[%s1209_s0 + $0x78] sm:$0xff]  ;;  %v206_v57 = vld [vmem:[%s1210_s1 + $0x8] sm:$0xff]  ;;  %s677_s5 = sshll.u32 %s971_s16, 6 }
  0x18   : > { %v1080_v31 = vld [vmem:[%s169_s17] sm:$0xf]  ;;  %v778_v56 = vpack.c.bf16 %v188_v55, %v187_v54  ;;  %v208_v58 = vld [vmem:[%s1210_s1 + $0x18] sm:$0xff]  ;;  %v207_v61 = vld [vmem:[%s1210_s1 + $0x10] sm:$0xff]  ;;  %s1167_s10 = scalar_lea.hbm %s1212_s3, %s677_s5  ;;  %s863_s17 = scalar_lea.vmem %s1169_s7, 64 }
  0x19   : > { %v216_v32 = vrot.slane %v1080_v31, %v1060_v24  ;;  %759 = vmatpush3.bf16.msra.mxu0 %v1063_v25  ;;  %v780_v59 = vpack.c.bf16 %v208_v58, %v206_v57  ;;  %v205_v60 = vld [vmem:[%s1210_s1] sm:$0xff]  ;;  %p864_p11 = scmp.ne.s32.totalorder %s1169_s7, %s863_s17  ;;  %s929_s16 = smov [#allocation2]  }
  0x1a   : > { %761 = vmatprep.subr.bf16.mxu0 %v1066_v26  ;;  %v782_v62 = vpack.c.bf16 %v207_v61, %v205_v60  ;;  %s867_s30 = sshll.u32 %s929_s16, 4  ;;  %s868_s30 = int_to_ptr.vmem [resolvable:$false] %s867_s30 }
  0x1b   : > { %v217_v37 = vcombine.high %v216_v32, %v216_v32  ;;  %781 = vmatprep.subr.bf16.mxu1 %v780_v59  ;;  %p865_p12 = pnand %p864_p11, %p988_p5  ;;  %s869_s19 = scalar_lea.vmem %s868_s30, 128 }
  0x1c   : > { %783 = vmatpush1.bf16.msra.mxu1 %v782_v62  ;;  %p870_p0 = scmp.lt.s32.totalorder %s1169_s7, %s868_s30  ;;  %p871_p1 = scmp.lt.s32.totalorder %s869_s19, %s863_s17 }
  0x1d   : > { %284 = vmatprep.mubr.f32.mxu0 %v217_v37  ;;  %763 = vmatpush3.bf16.msra.mxu0 %v1085_v33  ;;  %p866_p13 = pneg %p865_p12 }
  0x1e   : > { %765 = vmatprep.subr.bf16.mxu0 %v1088_v34  ;;  %785 = vmatprep.subr.bf16.mxu1 %v1008_v4  ;;  %v376_v4 = vsub.s32 0, %v1036_v17  ;;  %p872_p2 = por %p871_p1, %p870_p0 }
  0x20   : > { %p873_p3 = pnand %p872_p2, %p866_p13 }
  0x21   : > { %767 = vmatpush3.bf16.msra.mxu0 %v766_v40 }
  0x22   : > { %769 = vmatprep.subr.bf16.mxu0 %v768_v41 }
  0x25   : > { %771 = vmatpush3.bf16.msra.mxu0 %v770_v46 }
  0x26   : > { %773 = vmatprep.subr.bf16.mxu0 %v772_v47 }
  0x29   : > { %775 = vmatpush3.bf16.msra.mxu0 %v774_v52 }
  0x2a   : > { %777 = vmatprep.subr.bf16.mxu0 %v776_v53 }
  0x2d   : > { %779 = vmatpush3.bf16.msra.mxu0 %v778_v56 }
  0x2e   : > { %817 = vmatprep.subr.bf16.mxu0 %v780_v59 }
  0x30   : > { %285 = vmatmul.mubr.f32.vlgmr.msra.gmra.mrb[0].mxu0 %v216_v32 }
  0x31   : > { %819 = vmatpush1.bf16.msra.mxu0 %v782_v62  ;;  %561 = vmatprep.mubr.f32.mxu0 %v928_v63 }
 0x103   : > { %v710_v0 = vpop.f32.mrb[0].mxu0 }
 0x104   : > { %v711_v1 = vpop.f32.mrb[1].mxu0 }
 0x105   : > { %v712_v2 = vadd.f32 %v711_v1, %v710_v0 }
 0x107   : > { %v291_v3 = vsel %vm290_vm0, %v712_v2, 0.0 }
 0x108   : > { %v292_v5 = vrot.slane %v291_v3, 4 }
 0x10a   : > { %v293_v6 = vadd.f32 %v292_v5, %v291_v3 }
 0x10c   : > { %v294_v7 = vrot.slane %v293_v6, 2 }
 0x10e   : > { %v295_v8 = vadd.f32 %v294_v7, %v293_v6 }
 0x110   : > { %v296_v9 = vrot.slane %v295_v8, 1 }
 0x112   : > { %v297_v12 = vadd.f32 %v296_v9, %v295_v8 }
 0x114   : > { %v298_v13 = vmul.f32 0.03125, %v297_v12 }
 0x116   : > { %670 = vmatmul.mubr.msk.f32.vlgmr.msra.gmra.mrb[0].mxu1 %vm299_vm1, %v298_v13 }
 0x117   : > { %787 = vmatpush3.bf16.msra.mxu1 %v1019_v10 }
 0x118   : > { %789 = vmatprep.subr.bf16.mxu1 %v1021_v11 }
 0x11b   : > { %791 = vmatpush3.bf16.msra.mxu1 %v1039_v18 }
 0x11c   : > { %793 = vmatprep.subr.bf16.mxu1 %v1042_v19 }
 0x11f   : > { %795 = vmatpush3.bf16.msra.mxu1 %v1063_v25 }
 0x120   : > { %797 = vmatprep.subr.bf16.mxu1 %v1066_v26 }
 0x123   : > { %799 = vmatpush3.bf16.msra.mxu1 %v1085_v33 }
 0x124   : > { %801 = vmatprep.subr.bf16.mxu1 %v1088_v34 }
 0x127   : > { %803 = vmatpush3.bf16.msra.mxu1 %v766_v40 }
 0x128   : > { %805 = vmatprep.subr.bf16.mxu1 %v768_v41 }
 0x12b   : > { %807 = vmatpush3.bf16.msra.mxu1 %v770_v46 }
 0x12c   : > { %809 = vmatprep.subr.bf16.mxu1 %v772_v47 }
 0x12f   : > { %811 = vmatpush3.bf16.msra.mxu1 %v774_v52 }
 0x130   : > { %813 = vmatprep.subr.bf16.mxu1 %v776_v53 }
 0x133   : > { %815 = vmatpush3.bf16.msra.mxu1 %v778_v56 }
 0x1e9   : > { %v369_v10 = vpop.f32.mrb[0].mxu1 }
 0x1ea   : > { %v377_v11 = vrot.slane %v369_v10, %v376_v4  ;;  %v371_v14 = vpop.f32.mrb[1].mxu1 }
 0x1eb   : > { %v381_v15 = vrot.slane %v371_v14, %v376_v4 }
 0x1ed   : > { %v384_v16 = vcombine.low %v377_v11, %v381_v15 }
 0x1ef   : > { %v391_v18 = vrot.slane %v384_v16, %v1060_v24 }
 0x1f1   : > { %v393_v19 = vsub.f32 %v1080_v31, %v391_v18 }
 0x1f3   : > { %v394_v20 = vmul.f32 %v393_v19, %v393_v19 }
 0x1f5   : > { %v402_v21 = vrot.slane %v394_v20, %v1060_v24 }
 0x1f7   : > { %v403_v22 = vcombine.high %v402_v21, %v402_v21  ;;  %v407_v23 = vsel %vm406_vm2, %v402_v21, 0.0 }
 0x1f8   : > { %v408_v25 = vrot.slane %v407_v23, 4 }
 0x1f9   : > { %v414_v26 = vsel %vm406_vm2, %v403_v22, 0.0 }
 0x1fa   : > { %v415_v27 = vrot.slane %v414_v26, 4  ;;  %v409_v28 = vadd.f32 %v408_v25, %v407_v23 }
 0x1fc   : > { %v416_v17 = vadd.f32 %v415_v27, %v414_v26  ;;  %v410_v29 = vrot.slane %v409_v28, 2 }
 0x1fe   : > { %v417_v30 = vrot.slane %v416_v17, 2  ;;  %v411_v32 = vadd.f32 %v410_v29, %v409_v28 }
 0x200   : > { %v418_v33 = vadd.f32 %v417_v30, %v416_v17  ;;  %v412_v34 = vrot.slane %v411_v32, 1 }
 0x202   : > { %v419_v35 = vrot.slane %v418_v33, 1  ;;  %v413_v31 = vadd.f32 %v412_v34, %v411_v32 }
 0x204   : > { %v420_v36 = vadd.f32 %v419_v35, %v418_v33 }
 0x206   : > { %485 = vmatprep.mubr.f32.mxu1 %v420_v36 }
 0x207   : > { %486 = vmatmul.mubr.f32.vlgmr.msra.gmra.mrb[2].mxu1 %v413_v31 }
 0x2da   : > { %v745_v37 = vpop.f32.mrb[2].mxu1 }
 0x2db   : > { %v746_v38 = vpop.f32.mrb[3].mxu1 }
 0x2dc   : > { %v747_v39 = vadd.f32 %v746_v38, %v745_v37 }
 0x2de   : > { %v491_v40 = vmul.f32 0.03125, %v747_v39 }
 0x2e0   : > { %v492_v41 = vadd.f32 1e-05, %v491_v40 }
 0x2e2   : > { %861 = vrsqrt.f32 %v492_v41 }
 0x2ec   : > { %v862_v42 = vpop.eup %861 }
 0x2ed   : > { %671 = vmatmul.mubr.msk.f32.vlgmr.msra.gmra.mrb[2].mxu0 %vm299_vm1, %v862_v42 }
 0x3c0   : > { %v563_v43 = vpop.f32.mrb[2].mxu0 }
 0x3c1   : > { %v571_v44 = vrot.slane %v563_v43, %v376_v4  ;;  %v565_v45 = vpop.f32.mrb[3].mxu0 }
 0x3c2   : > { %v575_v46 = vrot.slane %v565_v45, %v376_v4 }
 0x3c4   : > { %v578_v47 = vcombine.low %v571_v44, %v575_v46 }
 0x3c6   : > { %v585_v48 = vrot.slane %v578_v47, %v1060_v24 }
 0x3c8   : > { %v587_v49 = vmul.f32 %v585_v48, %v393_v19 }
 0x3ca   : > { %588 = vst [vmem:[%s164_s6] sm:$0xf] %v587_v49 }
 0x3cb   : > { %876 = shalt.err (!%p873_p3)
}
 0x3cc   : > { %s877_s20 = scalar_lea.hbm %s1167_s10, 64  ;;  %s881_s26 = scalar_lea.hbm %s1212_s3, 128 }
 0x3cd   : > { %p878_p4 = scmp.ne.s32.totalorder %s1167_s10, %s877_s20  ;;  %p882_p9 = scmp.lt.u32.totalorder %s1167_s10, %s1212_s3 }
 0x3ce   : > { %p883_p10 = scmp.lt.u32.totalorder %s881_s26, %s877_s20  ;;  %p885_p12 = scmp.lt.u32.totalorder %s877_s20, %s1167_s10 }
 0x3cf   : > { %p879_p7 = pnand %p878_p4, %p988_p5 }
 0x3d0   : > { %p884_p11 = por %p883_p10, %p882_p9 }
 0x3d1   : > { %p880_p8 = pneg %p879_p7 }
 0x3d2   : > { %p886_p13 = por %p885_p12, %p884_p11 }
 0x3d4   : > { %p887_p0 = pnand %p886_p13, %p880_p8 }
 0x3d6   : > { %890 = shalt.err (!%p887_p0)
}
 0x3d7   : > { %820 = dma.vmem_to_hbm [thread:$0]  (%p988_p5), %s1169_s7, 64, %s1167_s10, %s590_s11  }
 0x3d8 PF: > { %p826_p1 = scmp.ge.s32.totalorder %s925_s15, 2  ;;  %s616_s29 = sand.u32 1, %s913_s12  }
 0x3d9   : > { %s617_s4 = scalar_lea.sflag [#allocation3], %s616_s29 }
 0x3da   : > { %p823_p2 = pnand %p826_p1, %p992_p6 }
 0x3dc   : > { %908 = dma.done.wait (!%p823_p2), %s617_s4, 64  }
 0x3dd   : > { %910 = vsyncadd (!%p823_p2), %s617_s4, 4294967232  ;;  %p13_p3 = scmp.ge.s32.totalorder %s975_s18, 4   ;;  %s1215_s12 = smov %s917_s13 }
 0x3de   : > { %s1216_s13 = smov %s921_s14  ;;  %s1217_s14 = smov %s986_s21 }
 0x3df   : > { %s1218_s15 = smov %s975_s18  ;;  %15 = sbr.rel (!%p13_p3) target bundleno = 3 (0x3), region = 67 }
 0x3e6   :  { %622 = vsyncpa [#allocation3], 1 }
 0x3e7   :  { %624 = vsyncpa [#allocation3 + $0x1], 1 }

</bundles_post_ra>
